<compile_context>
chip_gen: v7x
topology: tpu7x:2x2x1
jax: 0.10.0
libtpu: 0.0.40
codegen_flags: <defaults>
</compile_context>

<pallas_src>
import functools

import jax
import jax.numpy as jnp
from jax.experimental import pallas as pl
from jax.experimental.pallas import tpu as pltpu

BN_EPS = 1e-5
LANE = 128
SUBLANE = 8


def _round_up(n, m):
    return ((n + m - 1) // m) * m


# ----------------------------- fused Pallas kernel -------------------------- #

def _make_mlp_kernel(segments, final_seg):
    """segments: tuple of (row_off, rows, cols) weight blocks inside the packed
    parameter buffer (one per hidden layer, bias + ones-propagation included).
    final_seg: (row_off, cols) for the single-row output weight vector."""
    final_off, final_cols = final_seg

    def kernel(x_ref, p_ref, o_ref):
        x = x_ref[...]                                      # [TB, in_pad], ones col = 1
        for (off, rows, cols) in segments:                  # static Python unroll
            w = p_ref[off:off + rows, :cols]                # tile-aligned static view
            x = jnp.maximum(
                jnp.dot(x, w, preferred_element_type=jnp.float32), 0.0)
        v = p_ref[final_off:final_off + 1, :final_cols]     # [1, cols] (bias in ones slot)
        out = jnp.sum(x * v, axis=-1, keepdims=True)        # VPU mul + XLU lane reduce
        o_ref[...] = jnp.broadcast_to(out, o_ref.shape)     # lane-dense store

    return kernel


# ------------------- parameter setup, BN folding & packing ------------------ #

def init_params(key, input_size, hidden_layers):
    """Init mimicking PyTorch Linear defaults; BN running stats randomized so
    the fold is actually exercised. Weights stored [in, out]."""
    params = []
    prev = input_size
    for h in hidden_layers:
        key, kw, kb, kg, kbe, km, kv = jax.random.split(key, 7)
        bound = 1.0 / jnp.sqrt(prev)
        params.append(dict(
            w=jax.random.uniform(kw, (prev, h), jnp.float32, -bound, bound),
            b=jax.random.uniform(kb, (1, h), jnp.float32, -bound, bound),
            gamma=jax.random.uniform(kg, (1, h), jnp.float32, 0.5, 1.5),
            beta=jax.random.uniform(kbe, (1, h), jnp.float32, -0.5, 0.5),
            mean=jax.random.uniform(km, (1, h), jnp.float32, -0.5, 0.5),
            var=jax.random.uniform(kv, (1, h), jnp.float32, 0.5, 1.5),
        ))
        prev = h
    key, kw, kb = jax.random.split(key, 3)
    bound = 1.0 / jnp.sqrt(prev)
    w_out = jax.random.uniform(kw, (prev, 1), jnp.float32, -bound, bound)
    b_out = jax.random.uniform(kb, (1, 1), jnp.float32, -bound, bound)
    return params, (w_out, b_out)


def fold_and_pack_params(input_size, hidden_params, out_params):
    """Fold eval-mode BN into each Linear, embed biases via the ones-column
    trick, zero-pad feature dims to the 128-lane tile and pack everything into
    ONE contiguous f32[total_rows, width] buffer.  Done once, off the hot path."""
    feats = [input_size] + [p["w"].shape[1] for p in hidden_params]
    pads = [_round_up(f + 1, LANE) for f in feats]          # +1: room for ones column
    width = max(pads)

    rows_list, segments, row_off = [], [], 0
    prev_f, prev_pad = feats[0], pads[0]
    for li, p in enumerate(hidden_params):
        out_f = p["w"].shape[1]
        out_pad = pads[li + 1]
        scale = p["gamma"][0] * jax.lax.rsqrt(p["var"][0] + BN_EPS)      # [out_f]
        w = p["w"] * scale[None, :]                                       # [prev_f, out_f]
        b = (p["b"][0] - p["mean"][0]) * scale + p["beta"][0]             # [out_f]
        W = jnp.zeros((prev_pad, width), jnp.float32)
        W = W.at[:prev_f, :out_f].set(w)
        W = W.at[prev_f, :out_f].set(b)       # ones column of prev layer feeds bias
        W = W.at[prev_f, out_f].set(1.0)      # propagate ones column (ReLU(1)=1)
        rows_list.append(W)
        segments.append((row_off, prev_pad, out_pad))
        row_off += prev_pad
        prev_f, prev_pad = out_f, out_pad

    w_out, b_out = out_params                 # [prev_f, 1], [1, 1]
    V = jnp.zeros((SUBLANE, width), jnp.float32)
    V = V.at[0, :prev_f].set(w_out[:, 0])
    V = V.at[0, prev_f].set(b_out[0, 0])      # bias rides the ones column
    rows_list.append(V)
    final_seg = (row_off, prev_pad)
    row_off += SUBLANE

    packed = jnp.concatenate(rows_list, axis=0)             # [total_rows, width]
    meta = dict(segments=tuple(segments), final=final_seg,
                in_pad=pads[0], in_f=input_size,
                width=width, total_rows=row_off)
    return packed, meta


# --------------------------------- wrapper ----------------------------------- #

def make_predictor(meta, block_batch=256):
    segments, final_seg = meta["segments"], meta["final"]
    in_pad, in_f = meta["in_pad"], meta["in_f"]
    width, total_rows = meta["width"], meta["total_rows"]
    kernel = _make_mlp_kernel(segments, final_seg)

    @jax.jit
    def predict(x, packed):
        batch = x.shape[0]
        tb = min(block_batch, _round_up(batch, SUBLANE))
        b_pad = _round_up(batch, tb)

        # Pad features to the lane tile, set the ones column, pad batch rows.
        xp = jnp.zeros((b_pad, in_pad), jnp.float32)
        xp = xp.at[:batch, :in_f].set(x.astype(jnp.float32))
        xp = xp.at[:, in_f].set(1.0)

        flops = b_pad * (sum(2 * r * c for (_, r, c) in segments) + 2 * width)
        bytes_acc = (b_pad * in_pad + total_rows * width + b_pad * LANE) * 4

        y_pad = pl.pallas_call(
            kernel,
            out_shape=jax.ShapeDtypeStruct((b_pad, LANE), jnp.float32),
            grid=(b_pad // tb,),
            in_specs=[
                pl.BlockSpec((tb, in_pad), lambda i: (i, 0)),
                # constant block index -> params DMA'd to VMEM once, reused
                pl.BlockSpec((total_rows, width), lambda i: (0, 0)),
            ],
            out_specs=pl.BlockSpec((tb, LANE), lambda i: (i, 0)),
            compiler_params=pltpu.CompilerParams(
                dimension_semantics=("parallel",)),
            cost_estimate=pl.CostEstimate(
                flops=flops, transcendentals=0, bytes_accessed=bytes_acc),
        )(xp, packed)
        return y_pad[:batch, :1]              # true scalar output column

    return predict


def reference_forward(x, hidden_params, out_params):
    """Pure-JAX reference with the original (unfolded) BN formulation."""
    for p in hidden_params:
        y = x @ p["w"] + p["b"]
        y = (y - p["mean"]) * jax.lax.rsqrt(p["var"] + BN_EPS) * p["gamma"] + p["beta"]
        x = jnp.maximum(y, 0.0)
    w_out, b_out = out_params
    return x @ w_out + b_out


# ---------------------------------- main ------------------------------------ #

if __name__ == "__main__":
    input_size = 32
    hidden_layers = [64, 32]
    dropout_rate = 0.2            # eval mode -> identity (no-op in forward)

    key = jax.random.PRNGKey(0)
    key, kp, kx_small, kx_big = jax.random.split(key, 4)

    hidden_params, out_params = init_params(kp, input_size, hidden_layers)
    packed, meta = fold_and_pack_params(input_size, hidden_params, out_params)
    predict = make_predictor(meta, block_batch=256)

    # batch=8 (degenerates to a single small step) and batch=384 (exercises the
    # batch grid + partial-tile padding path).
    for batch, kx in ((8, kx_small), (384, kx_big)):
        x = jax.random.normal(kx, (batch, input_size), jnp.float32)
        y = jax.block_until_ready(predict(x, packed))
        assert y.shape == (batch, 1), y.shape
        assert bool(jnp.all(jnp.isfinite(y)))
        y_ref = reference_forward(x, hidden_params, out_params)
        assert bool(jnp.allclose(y, y_ref, rtol=1e-4, atol=1e-5)), (
            batch, float(jnp.max(jnp.abs(y - y_ref))))

    print("KERNEL_OK")
</pallas_src>

<mosaic_0001>
module attributes {stable_mosaic.version = 11 : i64} {
  func.func @kernel(%arg0: i32, %arg1: memref<8x128xf32, #tpu.memory_space<vmem>>, %arg2: memref<264x128xf32, #tpu.memory_space<vmem>>, %arg3: memref<8x128xf32, #tpu.memory_space<vmem>>) attributes {dimension_semantics = [#tpu.dimension_semantics<parallel>], iteration_bounds = array<i64: 1>, scalar_prefetch = 0 : i64, scratch_operands = 0 : i64, tpu.core_type = #tpu.core_type<tc>, window_params = [{transform_indices = @transform_0, window_bounds = array<i64: 8, 128>}, {pipeline_mode = #tpu.pipeline_mode<synchronous>, transform_indices = @transform_1, window_bounds = array<i64: 264, 128>}, {transform_indices = @transform_2, window_bounds = array<i64: 8, 128>}]} {
    %c0 = arith.constant 0 : index
    %c0_0 = arith.constant 0 : index
    %0 = vector.load %arg1[%c0, %c0_0] : memref<8x128xf32, #tpu.memory_space<vmem>>, vector<8x128xf32>
    %c0_1 = arith.constant 0 : index
    %c0_2 = arith.constant 0 : index
    %1 = vector.load %arg2[%c0_1, %c0_2] : memref<264x128xf32, #tpu.memory_space<vmem>>, vector<128x128xf32>
    %cst = arith.constant dense<0.000000e+00> : vector<8x128xf32>
    %2 = tpu.matmul %0, %1, %cst {dimension_numbers = #tpu.dot_dimension_numbers<[1], [0], [0], [1], [0, 0, 1, 1], [], []>} : vector<8x128xf32>, vector<128x128xf32>, vector<8x128xf32> -> vector<8x128xf32>
    %cst_3 = arith.constant 0.000000e+00 : f32
    %3 = vector.broadcast %cst_3 : f32 to vector<8x128xf32>
    %4 = arith.maximumf %2, %3 : vector<8x128xf32>
    %c128 = arith.constant 128 : index
    %c0_4 = arith.constant 0 : index
    %5 = vector.load %arg2[%c128, %c0_4] : memref<264x128xf32, #tpu.memory_space<vmem>>, vector<128x128xf32>
    %cst_5 = arith.constant dense<0.000000e+00> : vector<8x128xf32>
    %6 = tpu.matmul %4, %5, %cst_5 {dimension_numbers = #tpu.dot_dimension_numbers<[1], [0], [0], [1], [0, 0, 1, 1], [], []>} : vector<8x128xf32>, vector<128x128xf32>, vector<8x128xf32> -> vector<8x128xf32>
    %cst_6 = arith.constant 0.000000e+00 : f32
    %7 = vector.broadcast %cst_6 : f32 to vector<8x128xf32>
    %8 = arith.maximumf %6, %7 : vector<8x128xf32>
    %c256 = arith.constant 256 : index
    %c0_7 = arith.constant 0 : index
    %9 = vector.load %arg2[%c256, %c0_7] : memref<264x128xf32, #tpu.memory_space<vmem>>, vector<1x128xf32>
    %10 = vector.broadcast %9 : vector<1x128xf32> to vector<8x128xf32>
    %11 = arith.mulf %8, %10 : vector<8x128xf32>
    %cst_8 = arith.constant dense<0.000000e+00> : vector<8xf32>
    %12 = vector.multi_reduction <add>, %11, %cst_8 [1] : vector<8x128xf32> to vector<8xf32>
    %13 = vector.shape_cast %12 : vector<8xf32> to vector<8x1xf32>
    %14 = vector.shape_cast %13 : vector<8x1xf32> to vector<8x1xf32>
    %15 = vector.broadcast %14 : vector<8x1xf32> to vector<8x128xf32>
    %c0_9 = arith.constant 0 : index
    %c0_10 = arith.constant 0 : index
    %16 = vector.load %arg3[%c0_9, %c0_10] : memref<8x128xf32, #tpu.memory_space<vmem>>, vector<8x128xf32>
    tpu.vector_store %arg3[%c0_9, %c0_10], %15 {strides = array<i32>} : memref<8x128xf32, #tpu.memory_space<vmem>>, vector<8x128xf32>,
    return
  }
  func.func @transform_0(%arg0: i32) -> (i32, i32) {
    %c0_i32 = arith.constant 0 : i32
    %c0_i32_0 = arith.constant 0 : i32
    return %arg0, %c0_i32 : i32, i32
  }
  func.func @transform_1(%arg0: i32) -> (i32, i32) {
    %c0_i32 = arith.constant 0 : i32
    %c0_i32_0 = arith.constant 0 : i32
    %c0_i32_1 = arith.constant 0 : i32
    return %c0_i32, %c0_i32_0 : i32, i32
  }
  func.func @transform_2(%arg0: i32) -> (i32, i32) {
    %c0_i32 = arith.constant 0 : i32
    %c0_i32_0 = arith.constant 0 : i32
    return %arg0, %c0_i32 : i32, i32
  }
}

</mosaic_0001>

<bundles_post_ra>
// kernel: predict.1
= control target key start
LH: loop header
LB: loop body
LE: loop exit
PB: predicated region body
PF: predicated region fallthrough
CT: control target
= control target key end

     0   :  { %7 = vsyncpa [#allocation3], 0  ;;  %s397_s9 = smov [#allocation2]   ;;  %s452_s0 = inlined_call_operand.vmem [shape: f32[8,128], index: 0, kind: input, shape index: {}]   ;;  %s453_s1 = inlined_call_operand.hbm [shape: f32[264,128], index: 1, kind: input, shape index: {}]   ;;  %s454_s2 = inlined_call_operand.vmem [shape: f32[8,128], index: 2, kind: output, shape index: {}]  }
   0x1   :  { %s15_s10 = sshll.u32 %s397_s9, 4  ;;  %s373_s13 = scalar_lea.hbm %s453_s1, 4224  ;;  %s16_s10 = int_to_ptr.vmem [resolvable:$true] %s15_s10 }
   0x2   :  { %p374_p0 = scmp.ne.s32.totalorder %s453_s1, %s373_s13  ;;  %p377_p1 = scmp.lt.u32.totalorder %s373_s13, %s453_s1 }
   0x4   :  { %p379_p2 = pnand %p377_p1, %p374_p0 }
   0x6   :  { %382 = shalt.err (!%p379_p2)
}
   0x7   :  { %s383_s18 = scalar_lea.vmem %s16_s10, 4224  ;;  %p388_p4 = scmp.lt.s32.totalorder %s16_s10, %s16_s10 }
   0x8   :  { %p384_p3 = scmp.ne.s32.totalorder %s16_s10, %s383_s18  ;;  %p389_p5 = scmp.lt.s32.totalorder %s383_s18, %s383_s18 }
   0xa   :  { %p390_p6 = por %p389_p5, %p388_p4 }
   0xc   :  { %p391_p7 = pnand %p390_p6, %p384_p3 }
   0xe   :  { %394 = shalt.err (!%p391_p7)
}
   0xf   :  { %s398_s19 = smov 128   ;;  %s399_s20 = smov 8  }
  0x10   :  { %21 = dma.hbm_to_vmem [thread:$0]  %s453_s1, 4224, %s16_s10, [#allocation3], %s398_s19, %s398_s19, %s399_s20  }
  0x11   :  { %395 = dma.done.wait [#allocation3], 4224  }
  0x12   :  { %396 = vsyncadd [#allocation3], 4294963072  ;;  %v400_v0 = vmov 0.0|0.0   ;;  %vm401_vm0 = vmmov 0   ;;  %v402_v1 = vmov 0.0   ;;  %v26_v2 = vld [vmem:[#allocation2] sm:$0xff] }
  0x13   :  { %319 = vmatprep.subr.bf16.mxu0 %v400_v0  ;;  %281 = vmatprep.mubr.msk.f32.mxu0 %vm401_vm0, %v402_v1  ;;  %v27_v3 = vld [vmem:[#allocation2 + $0x8] sm:$0xff]  ;;  %v28_v4 = vld [vmem:[#allocation2 + $0x10] sm:$0xff]  ;;  %v29_v6 = vld [vmem:[#allocation2 + $0x18] sm:$0xff] }
  0x14   :  { %343 = vmatprep.subr.bf16.mxu1 %v400_v0  ;;  %316 = vmatprep.mubr.msk.f32.mxu1 %vm401_vm0, %v402_v1  ;;  %v320_v5 = vpack.c.bf16 %v27_v3, %v26_v2  ;;  %v323_v7 = vpack.c.bf16 %v29_v6, %v28_v4  ;;  %v30_v8 = vld [vmem:[#allocation2 + $0x20] sm:$0xff]  ;;  %v31_v9 = vld [vmem:[#allocation2 + $0x28] sm:$0xff]  ;;  %v115_v12 = vld [vmem:[#allocation2 + $0x90] sm:$0xff] }
  0x15   :  { %v113_v10 = vld [vmem:[#allocation2 + $0x80] sm:$0xff]  ;;  %v114_v11 = vld [vmem:[#allocation2 + $0x88] sm:$0xff]  ;;  %v116_v13 = vld [vmem:[#allocation2 + $0x98] sm:$0xff]  ;;  %v326_v14 = vpack.c.bf16 %v31_v9, %v30_v8 }
  0x16   :  { %321 = vmatpush3.bf16.msra.mxu0 %v320_v5  ;;  %v344_v15 = vpack.c.bf16 %v114_v11, %v113_v10  ;;  %v32_v16 = vld [vmem:[#allocation2 + $0x30] sm:$0xff]  ;;  %v33_v17 = vld [vmem:[#allocation2 + $0x38] sm:$0xff]  ;;  %v347_v18 = vpack.c.bf16 %v116_v13, %v115_v12  ;;  %v117_v19 = vld [vmem:[#allocation2 + $0xa0] sm:$0xff] }
  0x17   :  { %322 = vmatprep.subr.bf16.mxu0 %v400_v0  ;;  %v118_v20 = vld [vmem:[#allocation2 + $0xa8] sm:$0xff]  ;;  %v329_v21 = vpack.c.bf16 %v33_v17, %v32_v16  ;;  %v34_v22 = vld [vmem:[#allocation2 + $0x40] sm:$0xff]  ;;  %v119_v25 = vld [vmem:[#allocation2 + $0xb0] sm:$0xff] }
  0x18   :  { %345 = vmatpush3.bf16.msra.mxu1 %v344_v15  ;;  %v35_v23 = vld [vmem:[#allocation2 + $0x48] sm:$0xff]  ;;  %v350_v24 = vpack.c.bf16 %v118_v20, %v117_v19  ;;  %v120_v26 = vld [vmem:[#allocation2 + $0xb8] sm:$0xff]  ;;  %v36_v28 = vld [vmem:[#allocation2 + $0x50] sm:$0xff] }
  0x19   :  { %346 = vmatprep.subr.bf16.mxu1 %v400_v0  ;;  %v332_v27 = vpack.c.bf16 %v35_v23, %v34_v22  ;;  %v37_v29 = vld [vmem:[#allocation2 + $0x58] sm:$0xff]  ;;  %v353_v30 = vpack.c.bf16 %v120_v26, %v119_v25  ;;  %v121_v31 = vld [vmem:[#allocation2 + $0xc0] sm:$0xff]  ;;  %v122_v32 = vld [vmem:[#allocation2 + $0xc8] sm:$0xff] }
  0x1a   :  { %324 = vmatpush3.bf16.msra.mxu0 %v323_v7  ;;  %v335_v33 = vpack.c.bf16 %v37_v29, %v36_v28  ;;  %v38_v34 = vld [vmem:[#allocation2 + $0x60] sm:$0xff]  ;;  %v39_v35 = vld [vmem:[#allocation2 + $0x68] sm:$0xff]  ;;  %v356_v36 = vpack.c.bf16 %v122_v32, %v121_v31  ;;  %v123_v37 = vld [vmem:[#allocation2 + $0xd0] sm:$0xff] }
  0x1b   :  { %325 = vmatprep.subr.bf16.mxu0 %v400_v0  ;;  %v124_v38 = vld [vmem:[#allocation2 + $0xd8] sm:$0xff]  ;;  %v338_v39 = vpack.c.bf16 %v39_v35, %v38_v34  ;;  %v40_v40 = vld [vmem:[#allocation2 + $0x70] sm:$0xff]  ;;  %v125_v43 = vld [vmem:[#allocation2 + $0xe0] sm:$0xff] }
  0x1c   :  { %348 = vmatpush3.bf16.msra.mxu1 %v347_v18  ;;  %v41_v41 = vld [vmem:[#allocation2 + $0x78] sm:$0xff]  ;;  %v359_v42 = vpack.c.bf16 %v124_v38, %v123_v37  ;;  %v126_v44 = vld [vmem:[#allocation2 + $0xe8] sm:$0xff]  ;;  %v25_v47 = vld [vmem:[%s452_s0] sm:$0xff] }
  0x1d   :  { %349 = vmatprep.subr.bf16.mxu1 %v400_v0  ;;  %v341_v45 = vpack.c.bf16 %v41_v41, %v40_v40  ;;  %v362_v46 = vpack.c.bf16 %v126_v44, %v125_v43  ;;  %v127_v48 = vld [vmem:[#allocation2 + $0xf0] sm:$0xff]  ;;  %v128_v49 = vld [vmem:[#allocation2 + $0xf8] sm:$0xff]  ;;  %v214_v55 = vld [vmem:[#allocation2 + $0x100] ss:$0 sm:$0xff] }
  0x1e   :  { %327 = vmatpush3.bf16.msra.mxu0 %v326_v14  ;;  %v365_v50 = vpack.c.bf16 %v128_v49, %v127_v48 }
  0x1f   :  { %328 = vmatprep.subr.bf16.mxu0 %v400_v0 }
  0x20   :  { %351 = vmatpush3.bf16.msra.mxu1 %v350_v24 }
  0x21   :  { %352 = vmatprep.subr.bf16.mxu1 %v400_v0 }
  0x22   :  { %330 = vmatpush3.bf16.msra.mxu0 %v329_v21 }
  0x23   :  { %331 = vmatprep.subr.bf16.mxu0 %v400_v0 }
  0x24   :  { %354 = vmatpush3.bf16.msra.mxu1 %v353_v30 }
  0x25   :  { %355 = vmatprep.subr.bf16.mxu1 %v400_v0 }
  0x26   :  { %333 = vmatpush3.bf16.msra.mxu0 %v332_v27 }
  0x27   :  { %334 = vmatprep.subr.bf16.mxu0 %v400_v0 }
  0x28   :  { %357 = vmatpush3.bf16.msra.mxu1 %v356_v36 }
  0x29   :  { %358 = vmatprep.subr.bf16.mxu1 %v400_v0 }
  0x2a   :  { %336 = vmatpush3.bf16.msra.mxu0 %v335_v33 }
  0x2b   :  { %337 = vmatprep.subr.bf16.mxu0 %v400_v0 }
  0x2c   :  { %360 = vmatpush3.bf16.msra.mxu1 %v359_v42 }
  0x2d   :  { %361 = vmatprep.subr.bf16.mxu1 %v400_v0 }
  0x2e   :  { %339 = vmatpush3.bf16.msra.mxu0 %v338_v39 }
  0x2f   :  { %340 = vmatprep.subr.bf16.mxu0 %v400_v0 }
  0x30   :  { %363 = vmatpush3.bf16.msra.mxu1 %v362_v46 }
  0x31   :  { %364 = vmatprep.subr.bf16.mxu1 %v400_v0 }
  0x32   :  { %342 = vmatpush3.bf16.msra.mxu0 %v341_v45 }
  0x34   :  { %366 = vmatpush3.bf16.msra.mxu1 %v365_v50 }
  0x35   :  { %282 = vmatmul.mubr.f32.vlgmr.msra.gmra.mrb[0].mxu0 %v25_v47 }
 0x108   :  { %v108_v51 = vpop.f32.mrb[0].mxu0 }
 0x109   :  { %v112_v52 = vmax.f32 %v108_v51, 0.0  ;;  %v283_v53 = vpop.f32.mrb[1].mxu0 }
 0x10b   :  { %317 = vmatmul.mubr.f32.vlgmr.msra.gmra.mrb[0].mxu1 %v112_v52 }
 0x1de   :  { %v195_v54 = vpop.f32.mrb[0].mxu1 }
 0x1df   :  { %v199_v56 = vmax.f32 %v195_v54, 0.0  ;;  %v318_v57 = vpop.f32.mrb[1].mxu1 }
 0x1e1   :  { %v205_v58 = vmul.f32 %v214_v55, %v199_v56 }
 0x1e3   :  { %206 = vadd.xlane.f32.xlu0 %v205_v58 }
 0x270   :  { %v207_v59 = vpop.xlane.xlu0 %206 }
 0x271   :  { %208 = vst [vmem:[%s454_s2] sm:$0xff] %v207_v59 }
 0x272   :  { %213 = vsyncpa [#allocation3], 1 }

</bundles_post_ra>
